<compile_context>
chip_gen: v5e
topology: v5e:2x2
jax: 0.10.0
libtpu: 0.0.40
codegen_flags: <defaults>
</compile_context>

<pallas_src>
import functools

import jax
import jax.numpy as jnp
from jax.experimental import pallas as pl
from jax.experimental.pallas import tpu as pltpu

N_EMBD = 64
HIDDEN = 4 * N_EMBD  # 256
DROPOUT_P = 0.2      # inference mode -> identity


def _ffn_kernel(x_ref, w1_ref, b1_ref, w2_ref, b2_ref, o_ref):
    # x_ref:  (tm, C)  bf16 activation tile (streamed)
    # w1_ref: (C, H)   bf16, resident across the grid
    # b1_ref: (1, H)   f32
    # w2_ref: (H, C)   bf16, resident across the grid
    # b2_ref: (1, C)   f32
    x = x_ref[...]
    h = jnp.dot(x, w1_ref[...], preferred_element_type=jnp.float32)   # MXU @ bf16 rate
    h = jnp.maximum(h + b1_ref[...], 0.0)                             # bias + ReLU in f32 (VPU)
    y = jnp.dot(h.astype(w2_ref.dtype), w2_ref[...],
                preferred_element_type=jnp.float32) + b2_ref[...]
    o_ref[...] = y.astype(o_ref.dtype)
    # TODO(synk): training-mode dropout (p=0.2) would use pltpu.prng_seed +
    #             pltpu.prng_random_bits and a 1/(1-p) scale; eval() => identity here.


def _round_up(n, m):
    return ((n + m - 1) // m) * m


@functools.partial(jax.jit, static_argnames=("tm",))
def feed_forward(x, w1, b1, w2, b2, *, tm=512):
    """x: (B, T, C). w1: (H, C), b1: (H,), w2: (C, H), b2: (C,) — PyTorch layout."""
    B, T, C = x.shape
    H = w1.shape[0]
    M = B * T

    # bf16 for the MXU inputs; biases stay f32 (added post-accumulation in f32).
    x2 = x.reshape(M, C).astype(jnp.bfloat16)
    w1_t = w1.T.astype(jnp.bfloat16)        # (C, H)
    w2_t = w2.T.astype(jnp.bfloat16)        # (H, C)
    b1_2 = b1.reshape(1, H).astype(jnp.float32)
    b2_2 = b2.reshape(1, C).astype(jnp.float32)

    # Row-tile selection: large tiles amortize per-grid-step overhead, but keep at
    # least two grid steps when possible so v7x's two TensorCores both get work.
    tm = max(8, min(tm, _round_up(pl.cdiv(M, 2), 8)))
    tm = (tm // 8) * 8
    grid = (pl.cdiv(M, tm),)   # partial last block: OOB reads padded, OOB stores masked

    cost = pl.CostEstimate(
        flops=4 * M * C * H,
        transcendentals=0,
        bytes_accessed=(M * C * 2          # x stream (bf16)
                        + M * C * 4        # output stream (f32)
                        + 2 * C * H * 2    # W1 + W2 (bf16, resident)
                        + (H + C) * 4),    # biases (f32)
    )

    out = pl.pallas_call(
        _ffn_kernel,
        out_shape=jax.ShapeDtypeStruct((M, C), x.dtype),
        grid_spec=pltpu.PrefetchScalarGridSpec(
            num_scalar_prefetch=0,
            grid=grid,
            in_specs=[
                pl.BlockSpec((tm, C), lambda i: (i, 0)),   # x rows stream
                pl.BlockSpec((C, H), lambda i: (0, 0)),    # W1 resident
                pl.BlockSpec((1, H), lambda i: (0, 0)),    # b1 resident
                pl.BlockSpec((H, C), lambda i: (0, 0)),    # W2 resident
                pl.BlockSpec((1, C), lambda i: (0, 0)),    # b2 resident
            ],
            out_specs=pl.BlockSpec((tm, C), lambda i: (i, 0)),
        ),
        compiler_params=pltpu.CompilerParams(
            dimension_semantics=("parallel",),
        ),
        cost_estimate=cost,
    )(x2, w1_t, b1_2, w2_t, b2_2)

    return out.reshape(B, T, C)


def init_params(key, n_embd=N_EMBD):
    """Deterministic init mirroring nn.Linear defaults: U(-1/sqrt(fan_in), 1/sqrt(fan_in))."""
    h = 4 * n_embd
    k1, k2, k3, k4 = jax.random.split(key, 4)
    bound1 = 1.0 / (n_embd ** 0.5)
    bound2 = 1.0 / (h ** 0.5)
    w1 = jax.random.uniform(k1, (h, n_embd), jnp.float32, -bound1, bound1)   # (out, in)
    b1 = jax.random.uniform(k2, (h,), jnp.float32, -bound1, bound1)
    w2 = jax.random.uniform(k3, (n_embd, h), jnp.float32, -bound2, bound2)   # (out, in)
    b2 = jax.random.uniform(k4, (n_embd,), jnp.float32, -bound2, bound2)
    return w1, b1, w2, b2


if __name__ == "__main__":
    key = jax.random.PRNGKey(0)
    kx, kp = jax.random.split(key)

    B, T, C = 2, 8, N_EMBD
    x = jax.random.normal(kx, (B, T, C), jnp.float32)
    w1, b1, w2, b2 = init_params(kp, C)

    y = feed_forward(x, w1, b1, w2, b2)
    y = jax.block_until_ready(y)

    # Reference in plain f32 JAX (inference-mode dropout = identity).
    ref = jnp.maximum(x @ w1.T + b1, 0.0) @ w2.T + b2
    assert y.shape == (B, T, C)
    # bf16 matmul inputs (f32 accumulation) -> loosened tolerance vs the f32 reference.
    assert jnp.allclose(y, ref, atol=5e-2, rtol=5e-2), "mismatch vs reference"

    print("KERNEL_OK")
</pallas_src>

<mosaic_0001>
module attributes {stable_mosaic.version = 11 : i64} {
  func.func @_ffn_kernel(%arg0: i32, %arg1: memref<8x64xbf16, #tpu.memory_space<vmem>>, %arg2: memref<64x256xbf16, #tpu.memory_space<vmem>>, %arg3: memref<1x256xf32, #tpu.memory_space<vmem>>, %arg4: memref<256x64xbf16, #tpu.memory_space<vmem>>, %arg5: memref<1x64xf32, #tpu.memory_space<vmem>>, %arg6: memref<8x64xf32, #tpu.memory_space<vmem>>) attributes {dimension_semantics = [#tpu.dimension_semantics<parallel>], iteration_bounds = array<i64: 2>, scalar_prefetch = 0 : i64, scratch_operands = 0 : i64, tpu.core_type = #tpu.core_type<tc>, window_params = [{transform_indices = @transform_0, window_bounds = array<i64: 8, 64>}, {pipeline_mode = #tpu.pipeline_mode<synchronous>, transform_indices = @transform_1, window_bounds = array<i64: 64, 256>}, {pipeline_mode = #tpu.pipeline_mode<synchronous>, transform_indices = @transform_2, window_bounds = array<i64: 1, 256>}, {pipeline_mode = #tpu.pipeline_mode<synchronous>, transform_indices = @transform_3, window_bounds = array<i64: 256, 64>}, {pipeline_mode = #tpu.pipeline_mode<synchronous>, transform_indices = @transform_4, window_bounds = array<i64: 1, 64>}, {transform_indices = @transform_5, window_bounds = array<i64: 8, 64>}]} {
    %c0 = arith.constant 0 : index
    %c0_0 = arith.constant 0 : index
    %0 = vector.load %arg1[%c0, %c0_0] : memref<8x64xbf16, #tpu.memory_space<vmem>>, vector<8x64xbf16>
    %c0_1 = arith.constant 0 : index
    %c0_2 = arith.constant 0 : index
    %1 = vector.load %arg2[%c0_1, %c0_2] : memref<64x256xbf16, #tpu.memory_space<vmem>>, vector<64x256xbf16>
    %cst = arith.constant dense<0.000000e+00> : vector<8x256xf32>
    %2 = tpu.matmul %0, %1, %cst {dimension_numbers = #tpu.dot_dimension_numbers<[1], [0], [0], [1], [0, 0, 1, 1], [], []>} : vector<8x64xbf16>, vector<64x256xbf16>, vector<8x256xf32> -> vector<8x256xf32>
    %c0_3 = arith.constant 0 : index
    %c0_4 = arith.constant 0 : index
    %3 = vector.load %arg3[%c0_3, %c0_4] : memref<1x256xf32, #tpu.memory_space<vmem>>, vector<1x256xf32>
    %4 = vector.broadcast %3 : vector<1x256xf32> to vector<8x256xf32>
    %5 = arith.addf %2, %4 : vector<8x256xf32>
    %cst_5 = arith.constant 0.000000e+00 : f32
    %6 = vector.broadcast %cst_5 : f32 to vector<8x256xf32>
    %7 = arith.maximumf %5, %6 : vector<8x256xf32>
    %8 = arith.truncf %7 : vector<8x256xf32> to vector<8x256xbf16>
    %c0_6 = arith.constant 0 : index
    %c0_7 = arith.constant 0 : index
    %9 = vector.load %arg4[%c0_6, %c0_7] : memref<256x64xbf16, #tpu.memory_space<vmem>>, vector<256x64xbf16>
    %cst_8 = arith.constant dense<0.000000e+00> : vector<8x64xf32>
    %10 = tpu.matmul %8, %9, %cst_8 {dimension_numbers = #tpu.dot_dimension_numbers<[1], [0], [0], [1], [0, 0, 1, 1], [], []>} : vector<8x256xbf16>, vector<256x64xbf16>, vector<8x64xf32> -> vector<8x64xf32>
    %c0_9 = arith.constant 0 : index
    %c0_10 = arith.constant 0 : index
    %11 = vector.load %arg5[%c0_9, %c0_10] : memref<1x64xf32, #tpu.memory_space<vmem>>, vector<1x64xf32>
    %12 = vector.broadcast %11 : vector<1x64xf32> to vector<8x64xf32>
    %13 = arith.addf %10, %12 : vector<8x64xf32>
    %c0_11 = arith.constant 0 : index
    %c0_12 = arith.constant 0 : index
    %14 = vector.load %arg6[%c0_11, %c0_12] : memref<8x64xf32, #tpu.memory_space<vmem>>, vector<8x64xf32>
    tpu.vector_store %arg6[%c0_11, %c0_12], %13 {strides = array<i32>} : memref<8x64xf32, #tpu.memory_space<vmem>>, vector<8x64xf32>,
    return
  }
  func.func @transform_0(%arg0: i32) -> (i32, i32) {
    %c0_i32 = arith.constant 0 : i32
    %c0_i32_0 = arith.constant 0 : i32
    return %arg0, %c0_i32 : i32, i32
  }
  func.func @transform_1(%arg0: i32) -> (i32, i32) {
    %c0_i32 = arith.constant 0 : i32
    %c0_i32_0 = arith.constant 0 : i32
    %c0_i32_1 = arith.constant 0 : i32
    return %c0_i32, %c0_i32_0 : i32, i32
  }
  func.func @transform_2(%arg0: i32) -> (i32, i32) {
    %c0_i32 = arith.constant 0 : i32
    %c0_i32_0 = arith.constant 0 : i32
    %c0_i32_1 = arith.constant 0 : i32
    return %c0_i32, %c0_i32_0 : i32, i32
  }
  func.func @transform_3(%arg0: i32) -> (i32, i32) {
    %c0_i32 = arith.constant 0 : i32
    %c0_i32_0 = arith.constant 0 : i32
    %c0_i32_1 = arith.constant 0 : i32
    return %c0_i32, %c0_i32_0 : i32, i32
  }
  func.func @transform_4(%arg0: i32) -> (i32, i32) {
    %c0_i32 = arith.constant 0 : i32
    %c0_i32_0 = arith.constant 0 : i32
    %c0_i32_1 = arith.constant 0 : i32
    return %c0_i32, %c0_i32_0 : i32, i32
  }
  func.func @transform_5(%arg0: i32) -> (i32, i32) {
    %c0_i32 = arith.constant 0 : i32
    %c0_i32_0 = arith.constant 0 : i32
    return %arg0, %c0_i32 : i32, i32
  }
}

</mosaic_0001>

<bundles_post_ra>
// kernel: feed_forward.1
= control target key start
LH: loop header
LB: loop body
LE: loop exit
PB: predicated region body
PF: predicated region fallthrough
CT: control target
= control target key end

     0   :  { %10 = vsyncpa [#allocation3], 0  ;;  %s1000_s0 = inlined_call_operand.vmem [shape: bf16[16,64], index: 0, kind: input, shape index: {}]   ;;  %s1001_s1 = inlined_call_operand.vmem [shape: bf16[64,256], index: 1, kind: input, shape index: {}]   ;;  %s1002_s2 = inlined_call_operand.vmem [shape: f32[1,256], index: 2, kind: input, shape index: {}]   ;;  %s1003_s3 = inlined_call_operand.vmem [shape: bf16[256,64], index: 3, kind: input, shape index: {}]   ;;  %s1004_s4 = inlined_call_operand.vmem [shape: f32[1,64], index: 4, kind: input, shape index: {}]   ;;  %s1005_s5 = inlined_call_operand.hbm [shape: f32[16,64], index: 5, kind: output, shape index: {}]  }
   0x1   :  { %12 = vsyncpa [#allocation3 + $0x1], 0  ;;  %s810_s18 = smov 0   ;;  %s812_s19 = smov 0  }
   0x2   :  { %s814_s20 = smov 0   ;;  %s816_s21 = smov 0  }
   0x3 LB: > { %s831_s22 = sadd.s32 4294967295, %s778_s21   ;;  %s544_s23 = sadd.s32 4294967294, %s778_s21   ;;  %s778_s21 = sphi %s816_s21, %s1011_s21   ;;  %s774_s20 = sphi %s814_s20, %s1010_s20   ;;  %s770_s19 = sphi %s812_s19, %s1009_s19   ;;  %s766_s18 = sphi %s810_s18, %s1008_s18  }
   0x4   : > { %s835_s24 = sadd.s32 1, %s778_s21   ;;  %s135_s25 = sadd.s32 1, %s774_s20 }
   0x5   : > { %s132_s26 = ssub.s32 %s778_s21, %s835_s24  ;;  %p145_p0 = scmp.ne.s32.totalorder %s774_s20, %s770_s19 }
   0x6   : > { %p133_p1 = scmp.eq.s32.totalorder %s132_s26, 0  ;;  %p146_p2 = scmp.eq.s32.totalorder %s831_s22, 1 }
   0x7   : > { %p151_p3 = scmp.ne.s32.totalorder %s770_s19, %s766_s18  ;;  %p152_p4 = scmp.eq.s32.totalorder %s544_s23, 1 }
   0x8   : > { %s846_s27 = scalar_select %p133_p1, %s774_s20, %s135_s25  }
   0x9   : > { %p848_p5 = por %p146_p2, %p145_p0  ;;  %p852_p6 = por %p152_p4, %p151_p3 }
   0xa   : > { %p547_p7 = scmp.ge.s32.totalorder %s778_s21, 1  ;;  %p189_p8 = scmp.lt.s32.totalorder %s778_s21, 3 }
   0xc   : > { %p190_p9 = pnand %p547_p7, %p189_p8 }
   0xd   : > { %p216_p10 = scmp.lt.s32.totalorder (!%p190_p9), %s831_s22, 1  ;;  %s213_s12 = sand.u32 (!%p190_p9), 1, %s770_s19  }
   0xe   : > { %193 = sbr.rel (%p190_p9) target bundleno = 310 (0x136), region = 40  ;;  %s548_s13 = sshll.u32 (!%p190_p9), %s213_s12, 3 }
   0xf   : > { %s215_s30 = scalar_lea.vmem (!%p190_p9), [#allocation2], %s548_s13  ;;  %s736_s11 = scalar_lea.hbm (!%p190_p9), %s1005_s5, 16 }
  0x10   : > { %s482_s6 = sshll.u32 (!%p190_p9), %s215_s30, 4  ;;  %s483_s6 = int_to_ptr.vmem [resolvable:$true] %s482_s6 }
  0x13   : > { %v576_v0 = vld [vmem:[%s1001_s1 + $0x30] sm:$0xf]  ;;  %v659_v1 = vld [vmem:[%s1001_s1 + $0x34] sm:$0xf0]  ;;  %v658_v2 = vld [vmem:[%s1001_s1 + $0x34] sm:$0xf] }
  0x14   : > { %v577_v3 = vor.u32 %v659_v1, %v576_v0  ;;  %v578_v4 = vld [vmem:[%s1001_s1 + $0x38] sm:$0xf0]  ;;  %v568_v5 = vld [vmem:[%s1001_s1 + $0x20] sm:$0xf]  ;;  %v657_v6 = vld [vmem:[%s1001_s1 + $0x24] sm:$0xf0] }
  0x15   : > { %v581_v7 = vor.u32 %v658_v2, %v578_v4  ;;  %v656_v8 = vld [vmem:[%s1001_s1 + $0x24] sm:$0xf]  ;;  %v570_v9 = vld [vmem:[%s1001_s1 + $0x28] sm:$0xf0]  ;;  %v569_v10 = vor.u32 %v657_v6, %v568_v5  ;;  %v560_v12 = vld [vmem:[%s1001_s1 + $0x10] sm:$0xf] }
  0x16   : > { %284 = vmatpush.bf16.msra.mxu0 %v577_v3  ;;  %v573_v11 = vor.u32 %v656_v8, %v570_v9  ;;  %v655_v13 = vld [vmem:[%s1001_s1 + $0x14] sm:$0xf0]  ;;  %v654_v14 = vld [vmem:[%s1001_s1 + $0x14] sm:$0xf]  ;;  %v562_v15 = vld [vmem:[%s1001_s1 + $0x18] sm:$0xf0] }
  0x17   : > { %297 = vmatpush.bf16.msra.mxu1 %v581_v7  ;;  %v667_v16 = vld [vmem:[%s1003_s3 + $0x38] sm:$0xff]  ;;  %v561_v18 = vor.u32 %v655_v13, %v560_v12  ;;  %v552_v19 = vld [vmem:[%s1001_s1] sm:$0xf]  ;;  %s217_s25 = scalar_select %p216_p10, %s831_s22, 1  ;;  %v666_v20 = vld [vmem:[%s1003_s3 + $0x30] sm:$0xff]  ;;  %v565_v21 = vor.u32 %v654_v14, %v562_v15  ;;  %vm276_vm0 = vcmask 523264  }
  0x18   : > { %v675_v17 = vld [vmem:[%s1003_s3 + $0x78] sm:$0xff]  ;;  %442 = vmatpush.bf16.msra.mxu2 %v667_v16  ;;  %v653_v22 = vld [vmem:[%s1001_s1 + $0x4] sm:$0xf0]  ;;  %v652_v23 = vld [vmem:[%s1001_s1 + $0x4] sm:$0xf] }
  0x19   : > { %455 = vmatpush.bf16.msra.mxu3 %v675_v17  ;;  %v674_v24 = vld [vmem:[%s1003_s3 + $0x70] sm:$0xff]  ;;  %v554_v25 = vld [vmem:[%s1001_s1 + $0x8] sm:$0xf0]  ;;  %s549_s14 = sshll.u32 %s217_s25, 2  ;;  %v553_v26 = vor.u32 %v653_v22, %v552_v19  ;;  %v664_v31 = vld [vmem:[%s1003_s3 + $0x20] sm:$0xff] }
  0x1a   : > { %285 = vmatpush.bf16.msra.mxu0 %v569_v10  ;;  %v665_v27 = vld [vmem:[%s1003_s3 + $0x28] sm:$0xff]  ;;  %v557_v28 = vor.u32 %v652_v23, %v554_v25  ;;  %s219_s26 = scalar_lea.vmem %s1000_s0, %s549_s14  ;;  %v672_v32 = vld [vmem:[%s1003_s3 + $0x60] sm:$0xff]  ;;  %v663_v33 = vld [vmem:[%s1003_s3 + $0x18] sm:$0xff]  ;;  %s649_s14 = sshll.u32 %s831_s22, 3 }
  0x1b   : > { %298 = vmatpush.bf16.msra.mxu1 %v573_v11  ;;  %v673_v29 = vld [vmem:[%s1003_s3 + $0x68] sm:$0xff]  ;;  %v221_v30 = vld [vmem:[%s219_s26] sm:$0xf]  ;;  %v671_v34 = vld [vmem:[%s1003_s3 + $0x58] sm:$0xff]  ;;  %s480_s26 = scalar_lea.hbm %s1005_s5, %s649_s14  ;;  %s470_s22 = scalar_lea.sflag [#allocation3], %s213_s12 }
  0x1c   : > { %443 = vmatpush.bf16.msra.mxu2 %v666_v20  ;;  %v662_v35 = vld [vmem:[%s1003_s3 + $0x10] sm:$0xff]  ;;  %v661_v37 = vld [vmem:[%s1003_s3 + $0x8] sm:$0xff]  ;;  %v660_v39 = vld [vmem:[%s1003_s3] sm:$0xff]  ;;  %s484_s25 = sshll.u32 %s480_s26, 4  ;;  %s485_s25 = int_to_ptr.hbm [resolvable:$true] %s484_s25 }
  0x1d   : > { %456 = vmatpush.bf16.msra.mxu3 %v674_v24  ;;  %v670_v36 = vld [vmem:[%s1003_s3 + $0x50] sm:$0xff]  ;;  %v669_v38 = vld [vmem:[%s1003_s3 + $0x48] sm:$0xff]  ;;  %v668_v40 = vld [vmem:[%s1003_s3 + $0x40] sm:$0xff]  ;;  %s730_s7 = sshra.s32 %s485_s25, 4  ;;  %s731_s7 = int_to_ptr.hbm [resolvable:$true] %s730_s7 }
  0x1e   : > { %286 = vmatpush.bf16.msra.mxu0 %v561_v18  ;;  %v230_v41 = vld [vmem:[%s1002_s2] sm:$0x3]  ;;  %s732_s8 = scalar_lea.hbm %s731_s7, 8  ;;  %p737_p0 = scmp.lt.s32.totalorder %s731_s7, %s1005_s5 }
  0x1f   : > { %299 = vmatpush.bf16.msra.mxu1 %v565_v21  ;;  %v232_v42 = vperm.slane %v230_v41, 0  ;;  %v233_v43 = vperm.slane %v230_v41, 1  ;;  %v715_v54 = vld [vmem:[%s1004_s4] ss:$0 sm:$0xff]  ;;  %p733_p11 = scmp.ne.s32.totalorder %s731_s7, %s732_s8  ;;  %p738_p1 = scmp.lt.s32.totalorder %s736_s11, %s732_s8 }
  0x20   : > { %444 = vmatpush.bf16.msra.mxu2 %v665_v27 }
  0x21   : > { %457 = vmatpush.bf16.msra.mxu3 %v673_v29  ;;  %p734_p12 = pnand %p733_p11, %p848_p5  ;;  %p739_p2 = por %p738_p1, %p737_p0 }
  0x22   : > { %287 = vmatpush.bf16.msra.mxu0 %v553_v26 }
  0x23   : > { %300 = vmatpush.bf16.msra.mxu1 %v557_v28  ;;  %p735_p13 = pneg %p734_p12 }
  0x24   : > { %445 = vmatpush.bf16.msra.mxu2 %v664_v31 }
  0x25   : > { %582 = vmatmul.msk.bf16.vlgmr.msra.gmra.mxu0 %vm276_vm0, %v221_v30  ;;  %458 = vmatpush.bf16.msra.mxu3 %v672_v32  ;;  %p740_p3 = pnand %p739_p2, %p735_p13 }
  0x26   : > { %583 = vmatmul.msk.bf16.vlgmr.msra.gmra.mxu1 %vm276_vm0, %v221_v30 }
  0x28   : > { %446 = vmatpush.bf16.msra.mxu2 %v663_v33 }
  0x29   : > { %459 = vmatpush.bf16.msra.mxu3 %v671_v34 }
  0x2c   : > { %447 = vmatpush.bf16.msra.mxu2 %v662_v35 }
  0x2d   : > { %460 = vmatpush.bf16.msra.mxu3 %v670_v36 }
  0x30   : > { %448 = vmatpush.bf16.msra.mxu2 %v661_v37 }
  0x31   : > { %461 = vmatpush.bf16.msra.mxu3 %v669_v38 }
  0x34   : > { %449 = vmatpush.bf16.msra.mxu2 %v660_v39 }
  0x35   : > { %462 = vmatpush.bf16.msra.mxu3 %v668_v40 }
  0xa2   : > { %v289_v44 = vpop.f32.mrf.mxu0 }
  0xa3   : > { %v290_v45 = vadd.f32 %v289_v44, %v232_v42  ;;  %v302_v46 = vpop.f32.mrf.mxu1 }
  0xa4   : > { %v303_v47 = vadd.f32 %v302_v46, %v233_v43 }
  0xa5   : > { %v306_v48 = vmax.f32 %v290_v45, 0.0 }
  0xa6   : > { %v307_v49 = vmax.f32 %v303_v47, 0.0 }
  0xa7   : > { %v308_v50 = vpack.c.bf16 %v306_v48, %v306_v48 }
  0xa8   : > { %v309_v51 = vpack.c.bf16 %v307_v49, %v307_v49 }
  0xa9   : > { %450 = vmatmul.bf16.vlgmr.msra.gmra.mxu2 %v308_v50 }
  0xaa   : > { %463 = vmatmul.bf16.vlgmr.msra.gmra.mxu3 %v309_v51  ;;  %v291_v52 = vpop.f32.mrf.mxu0 }
  0xab   : > { %v304_v53 = vpop.f32.mrf.mxu1 }
 0x12c   : > { %v451_v55 = vpop.f32.mrf.mxu2 }
 0x12d   : > { %v452_v56 = vadd.f32 %v715_v54, %v451_v55  ;;  %v464_v57 = vpop.f32.mrf.mxu3 }
 0x12f   : > { %v465_v58 = vadd.f32 %v464_v57, %v452_v56 }
 0x131   : > { %468 = vst.msk [vmem:[%s215_s30] sm:$0xff] %vm276_vm0, %v465_v58 }
 0x132   : > { %743 = shalt.err (!%p740_p3)
}
 0x133   : > { %676 = dma.vmem_to_hbm [thread:$0]  (%p848_p5), %s483_s6, 128, %s485_s25, %s470_s22  }
 0x134   : > { %v453_v59 = vpop.f32.mrf.mxu2 }
 0x135   : > { %v466_v60 = vpop.f32.mrf.mxu3 }
 0x136 PF: > { %p682_p4 = scmp.ge.s32.totalorder %s778_s21, 2  ;;  %s496_s12 = sand.u32 1, %s766_s18  }
 0x137   : > { %s497_s15 = scalar_lea.sflag [#allocation3], %s496_s12 }
 0x138   : > { %p679_p7 = pnand %p682_p4, %p852_p6 }
 0x13a   : > { %p680_p8 = pneg %p679_p7 }
 0x13c   : > { %761 = dma.done.wait (%p680_p8), %s497_s15, 128  }
 0x13d   : > { %763 = vsyncadd (%p680_p8), %s497_s15, 4294967168  ;;  %p15_p5 = scmp.ge.s32.totalorder %s835_s24, 4   ;;  %s1008_s18 = smov %s770_s19 }
 0x13e   : > { %s1009_s19 = smov %s774_s20  ;;  %s1010_s20 = smov %s846_s27 }
 0x13f   : > { %s1011_s21 = smov %s835_s24  ;;  %17 = sbr.rel (!%p15_p5) target bundleno = 3 (0x3), region = 75 }
 0x144   :  { %503 = vsyncpa [#allocation3], 1 }
 0x145   :  { %505 = vsyncpa [#allocation3 + $0x1], 1 }

</bundles_post_ra>
